<compile_context>
chip_gen: v5e
topology: v5e:2x2
jax: 0.10.0
libtpu: 0.0.40
codegen_flags: <defaults>
</compile_context>

<pallas_src>
import functools

import jax
import jax.numpy as jnp
from jax.experimental import pallas as pl
from jax.experimental.pallas import tpu as pltpu

_PZ_PARAMS = {
    "para": (0.0311, -0.048, 0.002, -0.0116, -0.1423, 1.0529, 0.3334),
    "ferro": (0.01555, -0.0269, 0.0007, -0.0048, -0.0843, 1.3981, 0.2611),
}

_MAX_BLOCK_BYTES = 2 << 20        # per-buffer block cap: 4 buffers -> 8 MiB VMEM
_MIN_PIPELINED_BYTES = 512 << 10  # below this, a single block is cheapest


def _sublane_multiple(dtype) -> int:
    """Minimum row granularity for the (sublane, 128) tile of this dtype."""
    return {4: 8, 2: 16, 1: 32}.get(jnp.dtype(dtype).itemsize, 8)


def _device_prefers_approx_rcp() -> bool:
    """v7x: approx rcp + Newton keeps the single EUP slot off the critical path."""
    try:
        kind = jax.devices()[0].device_kind.lower()
    except Exception:  # pragma: no cover - device query failure -> safe default
        return False
    return "v7" in kind


def _pz_kernel(rs_ref, out_ref, *, a, b, c, d, gamma, beta1, beta2,
               approx_reciprocal):
    # Load in native dtype, upcast in-register (free for f32, halves HBM bytes
    # for bf16/f16 compared to casting in the wrapper).
    rs = rs_ref[...].astype(jnp.float32)
    log_rs = jnp.log(rs)                        # EUP
    sqrt_rs = jnp.sqrt(rs)                      # EUP
    low = (a + c * rs) * log_rs + b + d * rs    # rs < 1 branch (VPU)
    denom = 1.0 + beta1 * sqrt_rs + beta2 * rs
    if approx_reciprocal:
        # v7x path: approx EUP vrcp + one Newton-Raphson step on the VPU.
        r = pl.reciprocal(denom, approx=True)
        r = r * (2.0 - denom * r)
        high = gamma * r
    else:
        # v5e/v6e path: exact divide (HBM is the binding slot; matches ref).
        high = gamma / denom
    out_ref[...] = jnp.where(rs < 1.0, low, high).astype(out_ref.dtype)


def _pz_jnp(rs_f32, a, b, c, d, gamma, beta1, beta2):
    """Plain-jnp PZ formula (f32), used only for the <128-element ragged tail."""
    low = (a + c * rs_f32) * jnp.log(rs_f32) + b + d * rs_f32
    high = gamma / (1.0 + beta1 * jnp.sqrt(rs_f32) + beta2 * rs_f32)
    return jnp.where(rs_f32 < 1.0, low, high)


def _choose_block_rows(rows: int, cols: int, itemsize: int, sublane: int) -> int:
    """Even, balanced, VMEM-safe block size.

    * tiny slabs (< 512 KiB): single block (pipeline overhead would dominate)
    * otherwise: an even number of >= 4 blocks, each <= 2 MiB and a multiple
      of the dtype sublane, so both v7x TensorCores get equal work and the
      DMA/compute pipeline streams.
    """
    total_bytes = rows * cols * itemsize
    if total_bytes < _MIN_PIPELINED_BYTES:
        return rows  # block spans the full (possibly odd) rows dim

    row_bytes = cols * itemsize
    max_rows = max(sublane, (_MAX_BLOCK_BYTES // row_bytes) // sublane * sublane)

    num_blocks = max(4, -(-rows // max_rows))
    num_blocks += num_blocks % 2  # keep it even (v7x megacore balance)
    while True:
        block_rows = -(-rows // num_blocks)                  # cdiv
        block_rows = -(-block_rows // sublane) * sublane     # round up to sublane
        if block_rows <= max_rows:
            return block_rows
        num_blocks += 2


def _run_slab(flat, rows, cols, dtype, params, approx_reciprocal):
    a, b, c, d, gamma, beta1, beta2 = params
    itemsize = jnp.dtype(dtype).itemsize
    sublane = _sublane_multiple(dtype)

    slab = jnp.reshape(flat, (rows, cols))
    block_rows = _choose_block_rows(rows, cols, itemsize, sublane)
    grid = (pl.cdiv(rows, block_rows),)  # trailing partial block masked by Pallas

    n = rows * cols
    kernel = functools.partial(
        _pz_kernel, a=a, b=b, c=c, d=d, gamma=gamma, beta1=beta1, beta2=beta2,
        approx_reciprocal=approx_reciprocal,
    )

    return pl.pallas_call(
        kernel,
        out_shape=jax.ShapeDtypeStruct((rows, cols), dtype),
        grid_spec=pltpu.PrefetchScalarGridSpec(
            num_scalar_prefetch=0,
            grid=grid,
            in_specs=[pl.BlockSpec((block_rows, cols), lambda i: (i, 0))],
            out_specs=pl.BlockSpec((block_rows, cols), lambda i: (i, 0)),
        ),
        compiler_params=pltpu.CompilerParams(
            dimension_semantics=("parallel",),
        ),
        cost_estimate=pl.CostEstimate(
            flops=9 * n, transcendentals=3 * n, bytes_accessed=2 * n * itemsize,
        ),
    )(slab)


def c_pz_forward(rs: jax.Array, spin_mode: str = "para", *,
                 approx_reciprocal: bool | None = None) -> jax.Array:
    """Elementwise Perdew-Zunger correlation energy per particle, ec(rs)."""
    params = _PZ_PARAMS[spin_mode]
    orig_shape = rs.shape
    dtype = rs.dtype
    n = rs.size
    if n == 0:
        return rs
    if approx_reciprocal is None:
        approx_reciprocal = _device_prefers_approx_rcp()

    # Widest lane-dense column count that divides numel -> padding-free reshape.
    cols = None
    for cand in (1024, 512, 256, 128):
        if n % cand == 0:
            cols = cand
            break

    flat = jnp.reshape(rs, (-1,))

    if cols is not None:
        out = _run_slab(flat, n // cols, cols, dtype, params, approx_reciprocal)
        return jnp.reshape(out, orig_shape)

    # Ragged numel (< 1/128 of inputs typically): kernel on the 128-aligned
    # prefix, plain jnp on the < 128-element tail.  Avoids a full jnp.pad copy.
    cols = 128
    n_main = (n // cols) * cols
    pieces = []
    if n_main:
        main_out = _run_slab(flat[:n_main], n_main // cols, cols, dtype, params,
                             approx_reciprocal)
        pieces.append(jnp.reshape(main_out, (-1,)))
    if n_main < n:
        # TODO(synk): tail (< 128 elems) computed with plain jnp, not Pallas.
        tail = flat[n_main:].astype(jnp.float32)
        pieces.append(_pz_jnp(tail, *params).astype(dtype))
    out = pieces[0] if len(pieces) == 1 else jnp.concatenate(pieces)
    return jnp.reshape(out, orig_shape)


def _reference(rs, spin_mode):
    a, b, c, d, gamma, beta1, beta2 = _PZ_PARAMS[spin_mode]
    return _pz_jnp(rs.astype(jnp.float32), a, b, c, d, gamma, beta1, beta2)


if __name__ == "__main__":
    key = jax.random.PRNGKey(0)
    k0, k1, k2 = jax.random.split(key, 3)

    # Primary: small grid shaped like the module's rs field; values straddle 1.0
    # so both branches of the `where` are exercised. 2048 elems -> divisor path.
    rs = jax.random.uniform(k0, (2, 4, 16, 16), dtype=jnp.float32,
                            minval=0.05, maxval=3.0)

    # Exact-divide path (v5e/v6e default): matches the reference formula tightly.
    out_para = c_pz_forward(rs, "para", approx_reciprocal=False)
    out_ferro = c_pz_forward(rs, "ferro", approx_reciprocal=False)
    jax.block_until_ready(out_para)
    jax.block_until_ready(out_ferro)
    assert out_para.shape == rs.shape and out_para.dtype == rs.dtype
    assert jnp.allclose(out_para, _reference(rs, "para"), rtol=1e-6, atol=1e-6)
    assert jnp.allclose(out_ferro, _reference(rs, "ferro"), rtol=1e-6, atol=1e-6)

    # Approx-reciprocal + Newton path (v7x default): slightly looser tolerance.
    out_approx = c_pz_forward(rs, "para", approx_reciprocal=True)
    jax.block_until_ready(out_approx)
    assert jnp.allclose(out_approx, _reference(rs, "para"), rtol=1e-4, atol=1e-5)

    # Auto path (whichever this chip prefers).
    out_auto = c_pz_forward(rs, "para")
    jax.block_until_ready(out_auto)
    assert jnp.allclose(out_auto, _reference(rs, "para"), rtol=1e-4, atol=1e-5)

    # Ragged numel (1155, not a multiple of 128) -> prefix kernel + jnp tail.
    rs_odd = jax.random.uniform(k1, (3, 5, 7, 11), dtype=jnp.float32,
                                minval=0.05, maxval=3.0)
    out_odd = c_pz_forward(rs_odd, "para", approx_reciprocal=False)
    jax.block_until_ready(out_odd)
    assert jnp.allclose(out_odd, _reference(rs_odd, "para"), rtol=1e-6, atol=1e-6)

    # Medium slab: balanced 4-step pipelined grid (304-row blocks over 1200 rows).
    rs_med = jax.random.uniform(k2, (1200, 1024), dtype=jnp.float32,
                                minval=0.05, maxval=3.0)
    out_med = c_pz_forward(rs_med, "para", approx_reciprocal=False)
    jax.block_until_ready(out_med)
    assert jnp.allclose(out_med, _reference(rs_med, "para"), rtol=1e-6, atol=1e-6)

    # Native bf16 streaming path (narrow HBM read/write, f32 math in-register).
    rs_bf16 = rs.astype(jnp.bfloat16)
    out_bf16 = c_pz_forward(rs_bf16, "para", approx_reciprocal=False)
    jax.block_until_ready(out_bf16)
    assert out_bf16.dtype == jnp.bfloat16
    ref_bf16 = _reference(rs_bf16.astype(jnp.float32), "para")
    assert jnp.allclose(out_bf16.astype(jnp.float32), ref_bf16,
                        rtol=2e-2, atol=2e-3)

    print("KERNEL_OK")
</pallas_src>

<mosaic_0001>
module attributes {stable_mosaic.version = 11 : i64} {
  func.func @_pz_kernel(%arg0: i32, %arg1: memref<2x1024xf32, #tpu.memory_space<vmem>>, %arg2: memref<2x1024xf32, #tpu.memory_space<vmem>>) attributes {dimension_semantics = [#tpu.dimension_semantics<parallel>], iteration_bounds = array<i64: 1>, scalar_prefetch = 0 : i64, scratch_operands = 0 : i64, tpu.core_type = #tpu.core_type<tc>, window_params = [{transform_indices = @transform_0, window_bounds = array<i64: 2, 1024>}, {transform_indices = @transform_1, window_bounds = array<i64: 2, 1024>}]} {
    %c0 = arith.constant 0 : index
    %c0_0 = arith.constant 0 : index
    %0 = vector.load %arg1[%c0, %c0_0] : memref<2x1024xf32, #tpu.memory_space<vmem>>, vector<2x1024xf32>
    %1 = math.log %0 : vector<2x1024xf32>
    %2 = math.sqrt %0 : vector<2x1024xf32>
    %cst = arith.constant 2.000000e-03 : f32
    %3 = vector.broadcast %cst : f32 to vector<2x1024xf32>
    %4 = arith.mulf %3, %0 : vector<2x1024xf32>
    %cst_1 = arith.constant 3.110000e-02 : f32
    %5 = vector.broadcast %cst_1 : f32 to vector<2x1024xf32>
    %6 = arith.addf %5, %4 : vector<2x1024xf32>
    %7 = arith.mulf %6, %1 : vector<2x1024xf32>
    %cst_2 = arith.constant -4.800000e-02 : f32
    %8 = vector.broadcast %cst_2 : f32 to vector<2x1024xf32>
    %9 = arith.addf %7, %8 : vector<2x1024xf32>
    %cst_3 = arith.constant -1.160000e-02 : f32
    %10 = vector.broadcast %cst_3 : f32 to vector<2x1024xf32>
    %11 = arith.mulf %10, %0 : vector<2x1024xf32>
    %12 = arith.addf %9, %11 : vector<2x1024xf32>
    %cst_4 = arith.constant 1.052900e+00 : f32
    %13 = vector.broadcast %cst_4 : f32 to vector<2x1024xf32>
    %14 = arith.mulf %13, %2 : vector<2x1024xf32>
    %cst_5 = arith.constant 1.000000e+00 : f32
    %15 = vector.broadcast %cst_5 : f32 to vector<2x1024xf32>
    %16 = arith.addf %15, %14 : vector<2x1024xf32>
    %cst_6 = arith.constant 3.334000e-01 : f32
    %17 = vector.broadcast %cst_6 : f32 to vector<2x1024xf32>
    %18 = arith.mulf %17, %0 : vector<2x1024xf32>
    %19 = arith.addf %16, %18 : vector<2x1024xf32>
    %cst_7 = arith.constant -1.423000e-01 : f32
    %20 = vector.broadcast %cst_7 : f32 to vector<2x1024xf32>
    %21 = arith.divf %20, %19 : vector<2x1024xf32>
    %cst_8 = arith.constant 1.000000e+00 : f32
    %22 = vector.broadcast %cst_8 : f32 to vector<2x1024xf32>
    %23 = arith.cmpf olt, %0, %22 : vector<2x1024xf32>
    %24 = arith.select %23, %12, %21 : vector<2x1024xi1>, vector<2x1024xf32>
    %c0_9 = arith.constant 0 : index
    %c0_10 = arith.constant 0 : index
    %25 = vector.load %arg2[%c0_9, %c0_10] : memref<2x1024xf32, #tpu.memory_space<vmem>>, vector<2x1024xf32>
    tpu.vector_store %arg2[%c0_9, %c0_10], %24 {strides = array<i32>} : memref<2x1024xf32, #tpu.memory_space<vmem>>, vector<2x1024xf32>,
    return
  }
  func.func @transform_0(%arg0: i32) -> (i32, i32) {
    %c0_i32 = arith.constant 0 : i32
    %c0_i32_0 = arith.constant 0 : i32
    return %arg0, %c0_i32 : i32, i32
  }
  func.func @transform_1(%arg0: i32) -> (i32, i32) {
    %c0_i32 = arith.constant 0 : i32
    %c0_i32_0 = arith.constant 0 : i32
    return %arg0, %c0_i32 : i32, i32
  }
}

</mosaic_0001>

<bundles_post_ra>
// kernel: tpu_custom_call.1
= control target key start
LH: loop header
LB: loop body
LE: loop exit
PB: predicated region body
PF: predicated region fallthrough
CT: control target
= control target key end

     0   :  { %6 = vsyncpa [#allocation3], 0  ;;  %s238_s0 = inlined_call_operand.hbm [shape: f32[2,1024], index: 0, kind: input, shape index: {}]   ;;  %s239_s1 = inlined_call_operand.hbm [shape: f32[2,1024], index: 1, kind: output, shape index: {}]  }
   0x1   :  { %7 = vsyncpa [#allocation4], 0  ;;  %s13_s8 = sshll.u32 %s238_s0, 4  ;;  %s192_s9 = smov [#allocation2]   ;;  %s14_s8 = int_to_ptr.hbm [resolvable:$true] %s13_s8 }
   0x2   :  { %s15_s10 = sshll.u32 %s192_s9, 4  ;;  %s16_s10 = int_to_ptr.vmem [resolvable:$true] %s15_s10 }
   0x3   :  { %18 = dma.hbm_to_vmem [thread:$0]  %s14_s8, 256, %s16_s10, [#allocation3]  }
   0x4   :  { %188 = dma.done.wait [#allocation3], 256  }
   0x5   :  { %189 = vsyncadd [#allocation3], 4294967040  ;;  %v207_v0 = vld [vmem:[#allocation2] sm:$0xff]  ;;  %v209_v1 = vld [vmem:[#allocation2 + $0x8] sm:$0xff]  ;;  %s193_s0 = smov [#allocation5]   ;;  %s116_s14 = sshll.u32 %s239_s1, 4  ;;  %s117_s14 = int_to_ptr.hbm [resolvable:$true] %s116_s14 }
   0x6   :  { %128 = vrsqrt.f32 %v207_v0  ;;  %vm36_vm0 = vcmp.eq.f32.partialorder %v207_v0, inf  ;;  %v39_v13 = vand.u32 2147483648, %v207_v0  ;;  %vm38_vm1 = vcmp.eq.f32.partialorder %v207_v0, 0.0  ;;  %s114_s11 = sshll.u32 %s193_s0, 4  ;;  %s115_s11 = int_to_ptr.vmem [resolvable:$true] %s114_s11 }
   0x7   :  { %130 = vrsqrt.f32 %v209_v1  ;;  %vm48_vm2 = vcmp.eq.f32.partialorder %v209_v1, inf  ;;  %v51_v16 = vand.u32 2147483648, %v209_v1  ;;  %vm50_vm3 = vcmp.eq.f32.partialorder %v209_v1, 0.0 }
   0x8   :  { %132 = vlog2.f32 %v207_v0  ;;  %v69_v21 = vmul.f32 0.3334, %v207_v0  ;;  %v70_v26 = vmul.f32 0.3334, %v209_v1  ;;  %v53_v29 = vmul.f32 0.002, %v207_v0 }
   0x9   :  { %134 = vlog2.f32 %v209_v1  ;;  %v54_v32 = vmul.f32 0.002, %v209_v1  ;;  %v61_v45 = vmul.f32 -0.0116, %v207_v0  ;;  %v62_v56 = vmul.f32 -0.0116, %v209_v1 }
   0xa   :  { %v55_v35 = vadd.f32 0.0311, %v53_v29  ;;  %vm103_vm11 = vcmp.lt.f32.partialorder %v207_v0, 1.0  ;;  %vm104_vm13 = vcmp.lt.f32.partialorder %v209_v1, 1.0 }
   0xb   :  { %v56_v38 = vadd.f32 0.0311, %v54_v32 }
   0xc   :  { %v129_v2 = vpop.eup %128 }
   0xd   :  { %v30_v3 = vmul.f32 %v129_v2, %v207_v0  ;;  %v131_v4 = vpop.eup %130 }
   0xe   :  { %v42_v6 = vmul.f32 %v131_v4, %v209_v1  ;;  %v133_v30 = vpop.eup %132 }
   0xf   :  { %v31_v5 = vmul.f32 %v129_v2, %v30_v3  ;;  %v135_v33 = vpop.eup %134  ;;  %v26_v34 = vmul.f32 0.6931472, %v133_v30 }
  0x10   :  { %v43_v8 = vmul.f32 %v131_v4, %v42_v6  ;;  %v28_v37 = vmul.f32 0.6931472, %v135_v33 }
  0x11   :  { %v32_v7 = vmul.f32 0.5, %v31_v5  ;;  %v57_v39 = vmul.f32 %v55_v35, %v26_v34 }
  0x12   :  { %v44_v10 = vmul.f32 0.5, %v43_v8  ;;  %v58_v46 = vmul.f32 %v56_v38, %v28_v37 }
  0x13   :  { %v33_v9 = vsub.f32 1.5, %v32_v7  ;;  %v59_v48 = vadd.f32 -0.048, %v57_v39 }
  0x14   :  { %v45_v12 = vsub.f32 1.5, %v44_v10  ;;  %v60_v55 = vadd.f32 -0.048, %v58_v46 }
  0x15   :  { %v34_v11 = vmul.f32 %v129_v2, %v33_v9  ;;  %v63_v58 = vadd.f32 %v61_v45, %v59_v48 }
  0x16   :  { %v46_v15 = vmul.f32 %v131_v4, %v45_v12  ;;  %v64_v2 = vadd.f32 %v62_v56, %v60_v55 }
  0x17   :  { %v35_v14 = vmul.f32 %v34_v11, %v207_v0 }
  0x18   :  { %v47_v18 = vmul.f32 %v46_v15, %v209_v1 }
  0x19   :  { %v37_v17 = vsel %vm36_vm0, %v207_v0, %v35_v14 }
  0x1a   :  { %v40_v19 = vsel %vm38_vm1, %v39_v13, %v37_v17  ;;  %v49_v22 = vsel %vm48_vm2, %v209_v1, %v47_v18 }
  0x1b   :  { %v65_v20 = vmul.f32 1.0529, %v40_v19  ;;  %v52_v23 = vsel %vm50_vm3, %v51_v16, %v49_v22 }
  0x1c   :  { %v66_v25 = vmul.f32 1.0529, %v52_v23 }
  0x1d   :  { %v67_v24 = vadd.f32 1.0, %v65_v20 }
  0x1e   :  { %v68_v28 = vadd.f32 1.0, %v66_v25 }
  0x1f   :  { %v71_v27 = vadd.f32 %v69_v21, %v67_v24 }
  0x20   :  { %v72_v31 = vadd.f32 %v70_v26, %v68_v28 }
  0x21   :  { %136 = vrcp.f32 %v71_v27  ;;  %v84_v41 = vand.u32 2147483648, %v71_v27  ;;  %vm78_vm4 = vweird.f32 %v71_v27  ;;  %v82_v44 = vand.u32 2147483647, %v71_v27 }
  0x22   :  { %138 = vrcp.f32 %v72_v31  ;;  %v99_v51 = vand.u32 2147483648, %v72_v31  ;;  %vm93_vm7 = vweird.f32 %v72_v31  ;;  %v97_v53 = vand.u32 2147483647, %v72_v31 }
  0x23   :  { %v85_v50 = vor.u32 1.1754944e-38, %v84_v41  ;;  %vm83_vm9 = vcmp.eq.f32.partialorder %v82_v44, 8.507059e+37 }
  0x24   :  { %v100_v60 = vor.u32 1.1754944e-38, %v99_v51  ;;  %vm98_vm12 = vcmp.eq.f32.partialorder %v97_v53, 8.507059e+37 }
  0x27   :  { %v137_v36 = vpop.eup %136 }
  0x28   :  { %v74_v40 = vmul.f32 %v137_v36, %v71_v27  ;;  %v139_v42 = vpop.eup %138  ;;  %vm79_vm5 = vweird.f32 %v137_v36 }
  0x29   :  { %v89_v47 = vmul.f32 %v139_v42, %v72_v31  ;;  %vm80_vm6 = vmor %vm78_vm4, %vm79_vm5  ;;  %vm94_vm8 = vweird.f32 %v139_v42 }
  0x2a   :  { %v75_v43 = vsub.f32 1.0, %v74_v40  ;;  %vm95_vm10 = vmor %vm93_vm7, %vm94_vm8 }
  0x2b   :  { %v90_v52 = vsub.f32 1.0, %v89_v47 }
  0x2c   :  { %v76_v49 = vmul.f32 %v137_v36, %v75_v43 }
  0x2d   :  { %v91_v57 = vmul.f32 %v139_v42, %v90_v52 }
  0x2e   :  { %v77_v54 = vadd.f32 %v137_v36, %v76_v49 }
  0x2f   :  { %v92_v62 = vadd.f32 %v139_v42, %v91_v57 }
  0x30   :  { %v81_v59 = vsel %vm80_vm6, %v137_v36, %v77_v54 }
  0x31   :  { %v86_v61 = vsel %vm83_vm9, %v85_v50, %v81_v59  ;;  %v96_v3 = vsel %vm95_vm10, %v139_v42, %v92_v62 }
  0x32   :  { %v87_v63 = vmul.f32 -0.1423, %v86_v61  ;;  %v101_v5 = vsel %vm98_vm12, %v100_v60, %v96_v3 }
  0x33   :  { %v102_v6 = vmul.f32 -0.1423, %v101_v5 }
  0x34   :  { %v105_v4 = vsel %vm103_vm11, %v63_v58, %v87_v63 }
  0x35   :  { %107 = vst [vmem:[#allocation5] sm:$0xff] %v105_v4  ;;  %v106_v0 = vsel %vm104_vm13, %v64_v2, %v102_v6 }
  0x36   :  { %108 = vst [vmem:[#allocation5 + $0x8] sm:$0xff] %v106_v0 }
  0x37   :  { %119 = dma.vmem_to_hbm [thread:$0]  %s115_s11, 256, %s117_s14, [#allocation4]  }
  0x38   :  { %190 = dma.done.wait [#allocation4], 256  }
  0x39   :  { %191 = vsyncadd [#allocation4], 4294967040 }
  0x3a   :  { %124 = vsyncpa [#allocation3], 1 }
  0x3b   :  { %125 = vsyncpa [#allocation4], 1 }

</bundles_post_ra>
